<compile_context>
chip_gen: v7x
topology: tpu7x:2x2x1
jax: 0.10.0
libtpu: 0.0.40
codegen_flags: <defaults>
</compile_context>

<pallas_src>
import functools

import jax
import jax.numpy as jnp
from jax.experimental import pallas as pl
from jax.experimental.pallas import tpu as pltpu

LOG_STD_MIN = -20.0
LOG_STD_MAX = 2.0
_MISH_CAP = 20.0  # beyond this, tanh(softplus(x)) == 1 in f32; also keeps exp(x)^2 finite


def _round_up(n, m):
    return ((n + m - 1) // m) * m


def _mish_fast(x):
    """mish(x) = x*tanh(softplus(x)) = x * w(w+2)/(w(w+2)+2), w = exp(x).
    One EUP exp + one approx reciprocal (instead of exp + log1p + tanh)."""
    w = jnp.exp(jnp.minimum(x, _MISH_CAP))          # overflow guard for w*w
    n = w * (w + 2.0)
    t = n * pl.reciprocal(n + 2.0, approx=True)
    return jnp.where(x > _MISH_CAP, x, x * t)       # exact passthrough for large x


def _mish_exact(x):
    # reference-only: numerically stable softplus + tanh (matches torch.nn.Mish)
    sp = jnp.maximum(x, 0.0) + jnp.log1p(jnp.exp(-jnp.abs(x)))
    return x * jnp.tanh(sp)


def policy_kernel(x_ref, *refs, n_shared):
    """refs = [w1, b1, ..., wN, bN, wm, bm, ws, bs, mean_ref, std_ref]."""
    mean_ref, std_ref = refs[-2], refs[-1]
    w = refs[:-2]
    cdt = w[0].dtype  # MXU-input dtype (bf16 or f32); accumulation is always f32

    # shared trunk: (num_layers - 1) x [Linear + Mish]; elementwise math stays f32
    h = x_ref[...]
    for i in range(n_shared):  # small static unroll
        h = jnp.dot(h.astype(cdt), w[2 * i][...],
                    preferred_element_type=jnp.float32) + w[2 * i + 1][...]
        h = _mish_fast(h)

    hc = h.astype(cdt)
    wm, bm = w[2 * n_shared], w[2 * n_shared + 1]
    ws, bs = w[2 * n_shared + 2], w[2 * n_shared + 3]

    mean = jnp.dot(hc, wm[...], preferred_element_type=jnp.float32) + bm[...]
    log_std = jnp.dot(hc, ws[...], preferred_element_type=jnp.float32) + bs[...]

    mean_ref[...] = mean.astype(mean_ref.dtype)
    std_ref[...] = jnp.exp(
        jnp.clip(log_std, LOG_STD_MIN, LOG_STD_MAX)).astype(std_ref.dtype)


def policy_forward(x, params, *, batch_tile=None, compute_dtype=jnp.bfloat16,
                   out_dtype=jnp.float32):
    """x: [B, latent] (f32 or bf16 — fed through unchanged). Returns (mean [B,A], std [B,A]).

    compute_dtype controls the MXU-input dtype only (weights + activation casts inside the
    kernel); accumulation and all elementwise math are f32. Set out_dtype=jnp.bfloat16 if the
    consumer tolerates it (halves output HBM bytes)."""
    shared, (wm, bm), (ws, bs) = params
    B, L = x.shape
    A = wm.shape[1]
    n_shared = len(shared)

    # Weight casts (wrapper-side, tiny arrays, typically cached under jit).
    flat_w = []
    for (wi, bi) in shared:
        flat_w += [wi.astype(compute_dtype), bi]
    flat_w += [wm.astype(compute_dtype), bm, ws.astype(compute_dtype), bs]

    # Batch tiling: cap at 512 rows so the grid has multiple steps (input/output DMA overlaps
    # compute; "parallel" axis shards across v7x's 2 TCs for B >= 64) while per-step VMEM
    # (weights + double-buffered x tile + h intermediate + 2 narrow outputs) stays at a few
    # MiB — comfortably inside v7x's 64 MiB physical and every generation's scoped default.
    if batch_tile is None:
        if B < 64:
            batch_tile = B                                    # launch-overhead regime: 1 step
        else:
            batch_tile = min(512, _round_up(pl.cdiv(B, 2), 8))
    batch_tile = max(1, min(batch_tile, B))
    if batch_tile < B:
        batch_tile = _round_up(batch_tile, 8)                 # sublane alignment when tiled
    grid = (pl.cdiv(B, batch_tile),)                          # last block may be partial

    def full_block(arr):
        # grid-invariant whole-array block: weights/biases stay resident in VMEM
        return pl.BlockSpec(arr.shape, lambda i: (0, 0))

    mean, std = pl.pallas_call(
        functools.partial(policy_kernel, n_shared=n_shared),
        out_shape=(jax.ShapeDtypeStruct((B, A), out_dtype),
                   jax.ShapeDtypeStruct((B, A), out_dtype)),
        grid=grid,
        in_specs=[pl.BlockSpec((batch_tile, L), lambda i: (i, 0))]   # x: tiled over batch
                 + [full_block(a) for a in flat_w],
        out_specs=(pl.BlockSpec((batch_tile, A), lambda i: (i, 0)),
                   pl.BlockSpec((batch_tile, A), lambda i: (i, 0))),
        compiler_params=pltpu.CompilerParams(
            dimension_semantics=("parallel",)),
    )(x, *flat_w)
    return mean, std


def init_params(key, latent_dim, action_dim, hidden_dim, num_layers=3):
    """Synthetic init, PyTorch-default-like (uniform +/- 1/sqrt(fan_in)).
    Weights stored as [in, out]; biases as [1, out].
    Returns (shared_layers=[(w,b), ...], mean_head=(w,b), log_std_head=(w,b))."""
    def linear(k, fan_in, fan_out):
        kw, kb = jax.random.split(k)
        bound = 1.0 / jnp.sqrt(fan_in)
        w = jax.random.uniform(kw, (fan_in, fan_out), jnp.float32, -bound, bound)
        b = jax.random.uniform(kb, (1, fan_out), jnp.float32, -bound, bound)
        return w, b

    keys = jax.random.split(key, num_layers + 1)
    shared = []
    cur = latent_dim
    for i in range(num_layers - 1):
        shared.append(linear(keys[i], cur, hidden_dim))
        cur = hidden_dim
    mean_head = linear(keys[-2], cur, action_dim)
    log_std_head = linear(keys[-1], cur, action_dim)
    return shared, mean_head, log_std_head


def policy_forward_ref(x, params, compute_dtype=jnp.float32):
    """Pure-JAX reference of the PyTorch forward(). With compute_dtype=bf16 it emulates the
    kernel's bf16 matmul inputs (f32 accumulation) so the comparison is apples-to-apples."""
    shared, (wm, bm), (ws, bs) = params
    c = lambda a: a.astype(compute_dtype)
    h = x
    for (w, b) in shared:
        h = _mish_exact(jnp.dot(c(h), c(w), preferred_element_type=jnp.float32) + b)
    mean = jnp.dot(c(h), c(wm), preferred_element_type=jnp.float32) + bm
    log_std = jnp.dot(c(h), c(ws), preferred_element_type=jnp.float32) + bs
    log_std = jnp.clip(log_std, LOG_STD_MIN, LOG_STD_MAX)
    return mean, jnp.exp(log_std)


if __name__ == "__main__":
    # Small, module-consistent shapes.
    batch = 16
    latent_dim = 32
    action_dim = 8
    hidden_dim = 128

    key = jax.random.PRNGKey(0)
    kx, kp, kx2 = jax.random.split(key, 3)
    x = jax.random.normal(kx, (batch, latent_dim), jnp.float32)
    params = init_params(kp, latent_dim, action_dim, hidden_dim)

    # --- f32 MXU path: exact module semantics (approx-reciprocal Mish is the only approximation)
    mean, std = policy_forward(x, params, compute_dtype=jnp.float32)
    jax.block_until_ready((mean, std))
    mean_r, std_r = policy_forward_ref(x, params)
    assert mean.shape == (batch, action_dim) and std.shape == (batch, action_dim)
    assert jnp.allclose(mean, mean_r, atol=1e-2, rtol=1e-2)
    assert jnp.allclose(std, std_r, atol=1e-2, rtol=1e-2)
    assert bool(jnp.all(std > 0.0))

    # --- default path: bf16 MXU inputs, f32 accumulation / f32 elementwise math
    mean_b, std_b = policy_forward(x, params)
    jax.block_until_ready((mean_b, std_b))
    mean_rb, std_rb = policy_forward_ref(x, params, compute_dtype=jnp.bfloat16)
    assert jnp.allclose(mean_b, mean_rb, atol=2e-2, rtol=2e-2)   # vs bf16-emulating reference
    assert jnp.allclose(std_b, std_rb, atol=2e-2, rtol=2e-2)
    assert jnp.allclose(mean_b, mean_r, atol=8e-2, rtol=8e-2)    # sanity vs exact f32 reference
    assert jnp.allclose(std_b, std_r, atol=8e-2, rtol=8e-2)
    assert bool(jnp.all(std_b > 0.0))

    # --- multi-step grid + ragged tail + bf16 x-producer path (B=200 -> 2 steps, partial last)
    B2 = 200
    x2_f32 = jax.random.normal(kx2, (B2, latent_dim), jnp.float32)
    x2 = x2_f32.astype(jnp.bfloat16)                 # bf16 x fed straight in, no wrapper cast
    mean2, std2 = policy_forward(x2, params)
    jax.block_until_ready((mean2, std2))
    mean2_r, std2_r = policy_forward_ref(x2_f32, params, compute_dtype=jnp.bfloat16)
    assert mean2.shape == (B2, action_dim) and std2.shape == (B2, action_dim)
    assert jnp.allclose(mean2, mean2_r, atol=2e-2, rtol=2e-2)
    assert jnp.allclose(std2, std2_r, atol=2e-2, rtol=2e-2)
    assert bool(jnp.all(std2 > 0.0))

    print("KERNEL_OK")
</pallas_src>

<mosaic_0001>
module attributes {stable_mosaic.version = 11 : i64} {
  func.func @policy_kernel(%arg0: i32, %arg1: memref<16x32xf32, #tpu.memory_space<vmem>>, %arg2: memref<32x128xf32, #tpu.memory_space<vmem>>, %arg3: memref<1x128xf32, #tpu.memory_space<vmem>>, %arg4: memref<128x128xf32, #tpu.memory_space<vmem>>, %arg5: memref<1x128xf32, #tpu.memory_space<vmem>>, %arg6: memref<128x8xf32, #tpu.memory_space<vmem>>, %arg7: memref<1x8xf32, #tpu.memory_space<vmem>>, %arg8: memref<128x8xf32, #tpu.memory_space<vmem>>, %arg9: memref<1x8xf32, #tpu.memory_space<vmem>>, %arg10: memref<16x8xf32, #tpu.memory_space<vmem>>, %arg11: memref<16x8xf32, #tpu.memory_space<vmem>>) attributes {dimension_semantics = [#tpu.dimension_semantics<parallel>], iteration_bounds = array<i64: 1>, scalar_prefetch = 0 : i64, scratch_operands = 0 : i64, tpu.core_type = #tpu.core_type<tc>, window_params = [{transform_indices = @transform_0, window_bounds = array<i64: 16, 32>}, {pipeline_mode = #tpu.pipeline_mode<synchronous>, transform_indices = @transform_1, window_bounds = array<i64: 32, 128>}, {pipeline_mode = #tpu.pipeline_mode<synchronous>, transform_indices = @transform_2, window_bounds = array<i64: 1, 128>}, {pipeline_mode = #tpu.pipeline_mode<synchronous>, transform_indices = @transform_3, window_bounds = array<i64: 128, 128>}, {pipeline_mode = #tpu.pipeline_mode<synchronous>, transform_indices = @transform_4, window_bounds = array<i64: 1, 128>}, {pipeline_mode = #tpu.pipeline_mode<synchronous>, transform_indices = @transform_5, window_bounds = array<i64: 128, 8>}, {pipeline_mode = #tpu.pipeline_mode<synchronous>, transform_indices = @transform_6, window_bounds = array<i64: 1, 8>}, {pipeline_mode = #tpu.pipeline_mode<synchronous>, transform_indices = @transform_7, window_bounds = array<i64: 128, 8>}, {pipeline_mode = #tpu.pipeline_mode<synchronous>, transform_indices = @transform_8, window_bounds = array<i64: 1, 8>}, {transform_indices = @transform_9, window_bounds = array<i64: 16, 8>}, {transform_indices = @transform_10, window_bounds = array<i64: 16, 8>}]} {
    %c0 = arith.constant 0 : index
    %c0_0 = arith.constant 0 : index
    %0 = vector.load %arg1[%c0, %c0_0] : memref<16x32xf32, #tpu.memory_space<vmem>>, vector<16x32xf32>
    %c0_1 = arith.constant 0 : index
    %c0_2 = arith.constant 0 : index
    %1 = vector.load %arg2[%c0_1, %c0_2] : memref<32x128xf32, #tpu.memory_space<vmem>>, vector<32x128xf32>
    %cst = arith.constant dense<0.000000e+00> : vector<16x128xf32>
    %2 = tpu.matmul %0, %1, %cst {dimension_numbers = #tpu.dot_dimension_numbers<[1], [0], [0], [1], [0, 0, 1, 1], [], []>} : vector<16x32xf32>, vector<32x128xf32>, vector<16x128xf32> -> vector<16x128xf32>
    %c0_3 = arith.constant 0 : index
    %c0_4 = arith.constant 0 : index
    %3 = vector.load %arg3[%c0_3, %c0_4] : memref<1x128xf32, #tpu.memory_space<vmem>>, vector<1x128xf32>
    %4 = vector.broadcast %3 : vector<1x128xf32> to vector<16x128xf32>
    %5 = arith.addf %2, %4 : vector<16x128xf32>
    %cst_5 = arith.constant 2.000000e+01 : f32
    %6 = vector.broadcast %cst_5 : f32 to vector<16x128xf32>
    %7 = arith.minimumf %5, %6 : vector<16x128xf32>
    %8 = math.exp %7 : vector<16x128xf32>
    %cst_6 = arith.constant 2.000000e+00 : f32
    %9 = vector.broadcast %cst_6 : f32 to vector<16x128xf32>
    %10 = arith.addf %8, %9 : vector<16x128xf32>
    %11 = arith.mulf %8, %10 : vector<16x128xf32>
    %cst_7 = arith.constant 2.000000e+00 : f32
    %12 = vector.broadcast %cst_7 : f32 to vector<16x128xf32>
    %13 = arith.addf %11, %12 : vector<16x128xf32>
    %14 = tpu.reciprocal %13 {approx = true} : vector<16x128xf32> -> vector<16x128xf32>
    %15 = arith.mulf %11, %14 : vector<16x128xf32>
    %cst_8 = arith.constant 2.000000e+01 : f32
    %16 = vector.broadcast %cst_8 : f32 to vector<16x128xf32>
    %17 = arith.cmpf ogt, %5, %16 : vector<16x128xf32>
    %18 = arith.mulf %5, %15 : vector<16x128xf32>
    %19 = arith.select %17, %5, %18 : vector<16x128xi1>, vector<16x128xf32>
    %c0_9 = arith.constant 0 : index
    %c0_10 = arith.constant 0 : index
    %20 = vector.load %arg4[%c0_9, %c0_10] : memref<128x128xf32, #tpu.memory_space<vmem>>, vector<128x128xf32>
    %cst_11 = arith.constant dense<0.000000e+00> : vector<16x128xf32>
    %21 = tpu.matmul %19, %20, %cst_11 {dimension_numbers = #tpu.dot_dimension_numbers<[1], [0], [0], [1], [0, 0, 1, 1], [], []>} : vector<16x128xf32>, vector<128x128xf32>, vector<16x128xf32> -> vector<16x128xf32>
    %c0_12 = arith.constant 0 : index
    %c0_13 = arith.constant 0 : index
    %22 = vector.load %arg5[%c0_12, %c0_13] : memref<1x128xf32, #tpu.memory_space<vmem>>, vector<1x128xf32>
    %23 = vector.broadcast %22 : vector<1x128xf32> to vector<16x128xf32>
    %24 = arith.addf %21, %23 : vector<16x128xf32>
    %cst_14 = arith.constant 2.000000e+01 : f32
    %25 = vector.broadcast %cst_14 : f32 to vector<16x128xf32>
    %26 = arith.minimumf %24, %25 : vector<16x128xf32>
    %27 = math.exp %26 : vector<16x128xf32>
    %cst_15 = arith.constant 2.000000e+00 : f32
    %28 = vector.broadcast %cst_15 : f32 to vector<16x128xf32>
    %29 = arith.addf %27, %28 : vector<16x128xf32>
    %30 = arith.mulf %27, %29 : vector<16x128xf32>
    %cst_16 = arith.constant 2.000000e+00 : f32
    %31 = vector.broadcast %cst_16 : f32 to vector<16x128xf32>
    %32 = arith.addf %30, %31 : vector<16x128xf32>
    %33 = tpu.reciprocal %32 {approx = true} : vector<16x128xf32> -> vector<16x128xf32>
    %34 = arith.mulf %30, %33 : vector<16x128xf32>
    %cst_17 = arith.constant 2.000000e+01 : f32
    %35 = vector.broadcast %cst_17 : f32 to vector<16x128xf32>
    %36 = arith.cmpf ogt, %24, %35 : vector<16x128xf32>
    %37 = arith.mulf %24, %34 : vector<16x128xf32>
    %38 = arith.select %36, %24, %37 : vector<16x128xi1>, vector<16x128xf32>
    %c0_18 = arith.constant 0 : index
    %c0_19 = arith.constant 0 : index
    %39 = vector.load %arg6[%c0_18, %c0_19] : memref<128x8xf32, #tpu.memory_space<vmem>>, vector<128x8xf32>
    %cst_20 = arith.constant dense<0.000000e+00> : vector<16x8xf32>
    %40 = tpu.matmul %38, %39, %cst_20 {dimension_numbers = #tpu.dot_dimension_numbers<[1], [0], [0], [1], [0, 0, 1, 1], [], []>} : vector<16x128xf32>, vector<128x8xf32>, vector<16x8xf32> -> vector<16x8xf32>
    %c0_21 = arith.constant 0 : index
    %c0_22 = arith.constant 0 : index
    %41 = vector.load %arg7[%c0_21, %c0_22] : memref<1x8xf32, #tpu.memory_space<vmem>>, vector<1x8xf32>
    %42 = vector.broadcast %41 : vector<1x8xf32> to vector<16x8xf32>
    %43 = arith.addf %40, %42 : vector<16x8xf32>
    %c0_23 = arith.constant 0 : index
    %c0_24 = arith.constant 0 : index
    %44 = vector.load %arg8[%c0_23, %c0_24] : memref<128x8xf32, #tpu.memory_space<vmem>>, vector<128x8xf32>
    %cst_25 = arith.constant dense<0.000000e+00> : vector<16x8xf32>
    %45 = tpu.matmul %38, %44, %cst_25 {dimension_numbers = #tpu.dot_dimension_numbers<[1], [0], [0], [1], [0, 0, 1, 1], [], []>} : vector<16x128xf32>, vector<128x8xf32>, vector<16x8xf32> -> vector<16x8xf32>
    %c0_26 = arith.constant 0 : index
    %c0_27 = arith.constant 0 : index
    %46 = vector.load %arg9[%c0_26, %c0_27] : memref<1x8xf32, #tpu.memory_space<vmem>>, vector<1x8xf32>
    %47 = vector.broadcast %46 : vector<1x8xf32> to vector<16x8xf32>
    %48 = arith.addf %45, %47 : vector<16x8xf32>
    %c0_28 = arith.constant 0 : index
    %c0_29 = arith.constant 0 : index
    %49 = vector.load %arg10[%c0_28, %c0_29] : memref<16x8xf32, #tpu.memory_space<vmem>>, vector<16x8xf32>
    tpu.vector_store %arg10[%c0_28, %c0_29], %43 {strides = array<i32>} : memref<16x8xf32, #tpu.memory_space<vmem>>, vector<16x8xf32>,
    %cst_30 = arith.constant -2.000000e+01 : f32
    %cst_31 = arith.constant 2.000000e+00 : f32
    %50 = vector.broadcast %cst_30 : f32 to vector<16x8xf32>
    %51 = arith.maximumf %50, %48 : vector<16x8xf32>
    %52 = vector.broadcast %cst_31 : f32 to vector<16x8xf32>
    %53 = arith.minimumf %52, %51 : vector<16x8xf32>
    %54 = math.exp %53 : vector<16x8xf32>
    %c0_32 = arith.constant 0 : index
    %c0_33 = arith.constant 0 : index
    %55 = vector.load %arg11[%c0_32, %c0_33] : memref<16x8xf32, #tpu.memory_space<vmem>>, vector<16x8xf32>
    tpu.vector_store %arg11[%c0_32, %c0_33], %54 {strides = array<i32>} : memref<16x8xf32, #tpu.memory_space<vmem>>, vector<16x8xf32>,
    return
  }
  func.func @transform_0(%arg0: i32) -> (i32, i32) {
    %c0_i32 = arith.constant 0 : i32
    %c0_i32_0 = arith.constant 0 : i32
    return %arg0, %c0_i32 : i32, i32
  }
  func.func @transform_1(%arg0: i32) -> (i32, i32) {
    %c0_i32 = arith.constant 0 : i32
    %c0_i32_0 = arith.constant 0 : i32
    %c0_i32_1 = arith.constant 0 : i32
    return %c0_i32, %c0_i32_0 : i32, i32
  }
  func.func @transform_2(%arg0: i32) -> (i32, i32) {
    %c0_i32 = arith.constant 0 : i32
    %c0_i32_0 = arith.constant 0 : i32
    %c0_i32_1 = arith.constant 0 : i32
    return %c0_i32, %c0_i32_0 : i32, i32
  }
  func.func @transform_3(%arg0: i32) -> (i32, i32) {
    %c0_i32 = arith.constant 0 : i32
    %c0_i32_0 = arith.constant 0 : i32
    %c0_i32_1 = arith.constant 0 : i32
    return %c0_i32, %c0_i32_0 : i32, i32
  }
  func.func @transform_4(%arg0: i32) -> (i32, i32) {
    %c0_i32 = arith.constant 0 : i32
    %c0_i32_0 = arith.constant 0 : i32
    %c0_i32_1 = arith.constant 0 : i32
    return %c0_i32, %c0_i32_0 : i32, i32
  }
  func.func @transform_5(%arg0: i32) -> (i32, i32) {
    %c0_i32 = arith.constant 0 : i32
    %c0_i32_0 = arith.constant 0 : i32
    %c0_i32_1 = arith.constant 0 : i32
    return %c0_i32, %c0_i32_0 : i32, i32
  }
  func.func @transform_6(%arg0: i32) -> (i32, i32) {
    %c0_i32 = arith.constant 0 : i32
    %c0_i32_0 = arith.constant 0 : i32
    %c0_i32_1 = arith.constant 0 : i32
    return %c0_i32, %c0_i32_0 : i32, i32
  }
  func.func @transform_7(%arg0: i32) -> (i32, i32) {
    %c0_i32 = arith.constant 0 : i32
    %c0_i32_0 = arith.constant 0 : i32
    %c0_i32_1 = arith.constant 0 : i32
    return %c0_i32, %c0_i32_0 : i32, i32
  }
  func.func @transform_8(%arg0: i32) -> (i32, i32) {
    %c0_i32 = arith.constant 0 : i32
    %c0_i32_0 = arith.constant 0 : i32
    %c0_i32_1 = arith.constant 0 : i32
    return %c0_i32, %c0_i32_0 : i32, i32
  }
  func.func @transform_9(%arg0: i32) -> (i32, i32) {
    %c0_i32 = arith.constant 0 : i32
    %c0_i32_0 = arith.constant 0 : i32
    return %arg0, %c0_i32 : i32, i32
  }
  func.func @transform_10(%arg0: i32) -> (i32, i32) {
    %c0_i32 = arith.constant 0 : i32
    %c0_i32_0 = arith.constant 0 : i32
    return %arg0, %c0_i32 : i32, i32
  }
}

</mosaic_0001>

<bundles_post_ra>
// kernel: tpu_custom_call.1
= control target key start
LH: loop header
LB: loop body
LE: loop exit
PB: predicated region body
PF: predicated region fallthrough
CT: control target
= control target key end

     0   :  { %vm47_vm0 = vcmask 261120   ;;  %vm467_vm5 = vcmask 64512   ;;  %s1039_s1 = inlined_call_operand.vmem [shape: f32[32,128], index: 1, kind: input, shape index: {}]   ;;  %s1040_s0 = inlined_call_operand.vmem [shape: f32[16,32], index: 0, kind: input, shape index: {}]   ;;  %s1041_s3 = inlined_call_operand.vmem [shape: f32[128,128], index: 3, kind: input, shape index: {}]   ;;  %s1042_s2 = inlined_call_operand.vmem [shape: f32[1,128], index: 2, kind: input, shape index: {}]   ;;  %s1043_s5 = inlined_call_operand.vmem [shape: f32[128,8], index: 5, kind: input, shape index: {}]   ;;  %s1044_s7 = inlined_call_operand.vmem [shape: f32[128,8], index: 7, kind: input, shape index: {}]   ;;  %s1045_s4 = inlined_call_operand.vmem [shape: f32[1,128], index: 4, kind: input, shape index: {}]   ;;  %s1046_s6 = inlined_call_operand.vmem [shape: f32[1,8], index: 6, kind: input, shape index: {}]   ;;  %s1047_s8 = inlined_call_operand.vmem [shape: f32[1,8], index: 8, kind: input, shape index: {}]   ;;  %s1048_s9 = inlined_call_operand.vmem [shape: f32[16,8], index: 9, kind: output, shape index: {0}]   ;;  %s1049_s10 = inlined_call_operand.vmem [shape: f32[16,8], index: 10, kind: output, shape index: {1}]  }
   0x1   :  { %v36_v0 = vld [vmem:[%s1039_s1] sm:$0xff]  ;;  %v37_v1 = vld [vmem:[%s1039_s1 + $0x8] sm:$0xff]  ;;  %v38_v2 = vld [vmem:[%s1039_s1 + $0x10] sm:$0xff] }
   0x2   :  { %v670_v3 = vpack.c.bf16 %v37_v1, %v36_v0  ;;  %v39_v4 = vld [vmem:[%s1039_s1 + $0x18] sm:$0xff]  ;;  %v34_v5 = vld [vmem:[%s1040_s0] sm:$0xff]  ;;  %v35_v7 = vld [vmem:[%s1040_s0 + $0x8] sm:$0xff] }
   0x3   :  { %v674_v6 = vpack.c.bf16 %v39_v4, %v38_v2  ;;  %562 = vmatprep.mubr.msk.f32.mxu0 %vm47_vm0, %v34_v5  ;;  %v151_v8 = vld [vmem:[%s1041_s3] sm:$0xff]  ;;  %v152_v9 = vld [vmem:[%s1041_s3 + $0x8] sm:$0xff]  ;;  %v153_v11 = vld [vmem:[%s1041_s3 + $0x10] sm:$0xff] }
   0x4   :  { %671 = vmatprep.subr.bf16.mxu0 %v670_v3  ;;  %v678_v10 = vpack.c.bf16 %v152_v9, %v151_v8  ;;  %v154_v12 = vld [vmem:[%s1041_s3 + $0x18] sm:$0xff]  ;;  %v155_v14 = vld [vmem:[%s1041_s3 + $0x20] sm:$0xff]  ;;  %v156_v15 = vld [vmem:[%s1041_s3 + $0x28] sm:$0xff] }
   0x5   :  { %673 = vmatpush3.bf16.msra.mxu0 %v670_v3  ;;  %v682_v13 = vpack.c.bf16 %v154_v12, %v153_v11  ;;  %v686_v16 = vpack.c.bf16 %v156_v15, %v155_v14  ;;  %v157_v17 = vld [vmem:[%s1041_s3 + $0x30] sm:$0xff]  ;;  %v158_v18 = vld [vmem:[%s1041_s3 + $0x38] sm:$0xff]  ;;  %v159_v20 = vld [vmem:[%s1041_s3 + $0x40] sm:$0xff] }
   0x6   :  { %675 = vmatprep.subr.bf16.mxu0 %v674_v6  ;;  %679 = vmatprep.subr.bf16.mxu1 %v678_v10  ;;  %v690_v19 = vpack.c.bf16 %v158_v18, %v157_v17  ;;  %v160_v21 = vld [vmem:[%s1041_s3 + $0x48] sm:$0xff]  ;;  %v161_v23 = vld [vmem:[%s1041_s3 + $0x50] sm:$0xff]  ;;  %v162_v24 = vld [vmem:[%s1041_s3 + $0x58] sm:$0xff] }
   0x7   :  { %681 = vmatpush3.bf16.msra.mxu1 %v678_v10  ;;  %v694_v22 = vpack.c.bf16 %v160_v21, %v159_v20  ;;  %v698_v25 = vpack.c.bf16 %v162_v24, %v161_v23  ;;  %v163_v26 = vld [vmem:[%s1041_s3 + $0x60] sm:$0xff]  ;;  %v164_v27 = vld [vmem:[%s1041_s3 + $0x68] sm:$0xff]  ;;  %v165_v29 = vld [vmem:[%s1041_s3 + $0x70] sm:$0xff] }
   0x8   :  { %683 = vmatprep.subr.bf16.mxu1 %v682_v13  ;;  %v702_v28 = vpack.c.bf16 %v164_v27, %v163_v26  ;;  %v166_v30 = vld [vmem:[%s1041_s3 + $0x78] sm:$0xff]  ;;  %v488_v32 = vld [vmem:[%s1042_s2] ss:$0 sm:$0xff]  ;;  %v272_v58 = vld [vmem:[%s1043_s5 + $0x8] sm:$0xff] }
   0x9   :  { %677 = vmatpush3.bf16.msra.mxu0 %v674_v6  ;;  %v706_v31 = vpack.c.bf16 %v166_v30, %v165_v29  ;;  %v271_v57 = vld [vmem:[%s1043_s5] sm:$0xff]  ;;  %v370_v61 = vld [vmem:[%s1044_s7 + $0x8] sm:$0xff]  ;;  %v273_v62 = vld [vmem:[%s1043_s5 + $0x10] sm:$0xff] }
   0xa   :  { %v369_v59 = vld [vmem:[%s1044_s7] sm:$0xff]  ;;  %v710_v60 = vpack.c.bf16 %v272_v58, %v271_v57  ;;  %v274_v63 = vld [vmem:[%s1043_s5 + $0x18] sm:$0xff]  ;;  %v371_v2 = vld [vmem:[%s1044_s7 + $0x10] sm:$0xff] }
   0xb   :  { %685 = vmatpush3.bf16.msra.mxu1 %v682_v13  ;;  %v742_v0 = vpack.c.bf16 %v370_v61, %v369_v59  ;;  %v714_v1 = vpack.c.bf16 %v274_v63, %v273_v62  ;;  %v372_v3 = vld [vmem:[%s1044_s7 + $0x18] sm:$0xff]  ;;  %v275_v4 = vld [vmem:[%s1043_s5 + $0x20] sm:$0xff]  ;;  %v276_v6 = vld [vmem:[%s1043_s5 + $0x28] sm:$0xff] }
   0xc   :  { %563 = vmatmul.mubr.msk.f32.vlgmr.msra.gmra.mrb[0].mxu0 %vm47_vm0, %v35_v7  ;;  %687 = vmatprep.subr.bf16.mxu1 %v686_v16  ;;  %v746_v5 = vpack.c.bf16 %v372_v3, %v371_v2  ;;  %v373_v7 = vld [vmem:[%s1044_s7 + $0x20] sm:$0xff]  ;;  %v374_v8 = vld [vmem:[%s1044_s7 + $0x28] sm:$0xff]  ;;  %v718_v9 = vpack.c.bf16 %v276_v6, %v275_v4  ;;  %v277_v11 = vld [vmem:[%s1043_s5 + $0x30] sm:$0xff] }
   0xd   :  { %711 = vmatprep.subr.bf16.mxu0 %v710_v60  ;;  %v750_v10 = vpack.c.bf16 %v374_v8, %v373_v7  ;;  %v278_v12 = vld [vmem:[%s1043_s5 + $0x38] sm:$0xff]  ;;  %v375_v13 = vld [vmem:[%s1044_s7 + $0x30] sm:$0xff]  ;;  %v279_v17 = vld [vmem:[%s1043_s5 + $0x40] sm:$0xff] }
   0xe   :  { %713 = vmatpush3.bf16.msra.mxu0 %v710_v60  ;;  %v376_v14 = vld [vmem:[%s1044_s7 + $0x38] sm:$0xff]  ;;  %v722_v15 = vpack.c.bf16 %v278_v12, %v277_v11  ;;  %v280_v18 = vld [vmem:[%s1043_s5 + $0x48] sm:$0xff]  ;;  %v281_v23 = vld [vmem:[%s1043_s5 + $0x50] sm:$0xff] }
   0xf   :  { %689 = vmatpush3.bf16.msra.mxu1 %v686_v16  ;;  %715 = vmatprep.subr.bf16.mxu0 %v714_v1  ;;  %v754_v16 = vpack.c.bf16 %v376_v14, %v375_v13  ;;  %v378_v20 = vld [vmem:[%s1044_s7 + $0x48] sm:$0xff]  ;;  %v726_v21 = vpack.c.bf16 %v280_v18, %v279_v17  ;;  %v282_v24 = vld [vmem:[%s1043_s5 + $0x58] sm:$0xff]  ;;  %v283_v29 = vld [vmem:[%s1043_s5 + $0x60] sm:$0xff] }
  0x10   :  { %691 = vmatprep.subr.bf16.mxu1 %v690_v19  ;;  %v380_v26 = vld [vmem:[%s1044_s7 + $0x58] sm:$0xff]  ;;  %v730_v27 = vpack.c.bf16 %v282_v24, %v281_v23  ;;  %v284_v30 = vld [vmem:[%s1043_s5 + $0x68] sm:$0xff]  ;;  %v492_v2 = vld [vmem:[%s1046_s6] ss:$0 sm:$0xff] }
  0x11   :  { %v493_v3 = vld [vmem:[%s1047_s8] ss:$0 sm:$0xff] }
  0x12   :  { %717 = vmatpush3.bf16.msra.mxu0 %v714_v1 }
  0x13   :  { %693 = vmatpush3.bf16.msra.mxu1 %v690_v19  ;;  %719 = vmatprep.subr.bf16.mxu0 %v718_v9  ;;  %v377_v19 = vld [vmem:[%s1044_s7 + $0x40] sm:$0xff] }
  0x14   :  { %695 = vmatprep.subr.bf16.mxu1 %v694_v22 }
  0x16   :  { %721 = vmatpush3.bf16.msra.mxu0 %v718_v9 }
  0x17   :  { %697 = vmatpush3.bf16.msra.mxu1 %v694_v22  ;;  %723 = vmatprep.subr.bf16.mxu0 %v722_v15  ;;  %v758_v22 = vpack.c.bf16 %v378_v20, %v377_v19 }
  0x18   :  { %699 = vmatprep.subr.bf16.mxu1 %v698_v25 }
  0x1a   :  { %725 = vmatpush3.bf16.msra.mxu0 %v722_v15 }
  0x1b   :  { %701 = vmatpush3.bf16.msra.mxu1 %v698_v25  ;;  %v379_v25 = vld [vmem:[%s1044_s7 + $0x50] sm:$0xff]  ;;  %727 = vmatprep.subr.bf16.mxu0 %v726_v21 }
  0x1c   :  { %703 = vmatprep.subr.bf16.mxu1 %v702_v28 }
  0x1e   :  { %729 = vmatpush3.bf16.msra.mxu0 %v726_v21 }
  0x1f   :  { %705 = vmatpush3.bf16.msra.mxu1 %v702_v28  ;;  %v762_v28 = vpack.c.bf16 %v380_v26, %v379_v25  ;;  %731 = vmatprep.subr.bf16.mxu0 %v730_v27 }
  0x20   :  { %707 = vmatprep.subr.bf16.mxu1 %v706_v31 }
  0x22   :  { %733 = vmatpush3.bf16.msra.mxu0 %v730_v27 }
  0x23   :  { %709 = vmatpush3.bf16.msra.mxu1 %v706_v31  ;;  %v381_v31 = vld [vmem:[%s1044_s7 + $0x60] sm:$0xff] }
  0x24   :  { %743 = vmatprep.subr.bf16.mxu1 %v742_v0 }
  0xdf   :  { %v564_v33 = vpop.f32.mrb[0].mxu0 }
  0xe0   :  { %v126_v34 = vadd.f32 %v564_v33, %v488_v32  ;;  %v120_v35 = vpop.f32.mrb[1].mxu0  ;;  %v734_v33 = vpack.c.bf16 %v284_v30, %v283_v29 }
  0xe1   :  { %v121_v36 = vadd.f32 %v488_v32, %v120_v35  ;;  %v382_v32 = vld [vmem:[%s1044_s7 + $0x68] sm:$0xff]  ;;  %v285_v35 = vld [vmem:[%s1043_s5 + $0x70] sm:$0xff] }
  0xe2   :  { %v130_v37 = vmin.f32 %v126_v34, 20.0  ;;  %vm146_vm2 = vcmp.gt.f32.partialorder %v126_v34, 20.0  ;;  %735 = vmatprep.subr.bf16.mxu0 %v734_v33 }
  0xe3   :  { %v129_v38 = vmin.f32 %v121_v36, 20.0  ;;  %vm145_vm1 = vcmp.gt.f32.partialorder %v121_v36, 20.0  ;;  %737 = vmatpush3.bf16.msra.mxu0 %v734_v33 }
  0xe4   :  { %v133_v39 = vmul.f32 1.442695, %v130_v37  ;;  %v383_v37 = vld [vmem:[%s1044_s7 + $0x70] sm:$0xff] }
  0xe5   :  { %v131_v40 = vmul.f32 1.442695, %v129_v38  ;;  %v384_v38 = vld [vmem:[%s1044_s7 + $0x78] sm:$0xff] }
  0xe6   :  { %774 = vpow2.f32 %v133_v39 }
  0xe7   :  { %776 = vpow2.f32 %v131_v40  ;;  %v770_v40 = vpack.c.bf16 %v384_v38, %v383_v37 }
  0xf0   :  { %v775_v41 = vpop.eup %774 }
  0xf1   :  { %v777_v42 = vpop.eup %776  ;;  %v136_v43 = vadd.f32 2.0, %v775_v41 }
  0xf2   :  { %v135_v44 = vadd.f32 2.0, %v777_v42 }
  0xf3   :  { %v138_v45 = vmul.f32 %v775_v41, %v136_v43  ;;  %v491_v41 = vld [vmem:[%s1045_s4] ss:$0 sm:$0xff] }
  0xf4   :  { %v137_v46 = vmul.f32 %v777_v42, %v135_v44 }
  0xf5   :  { %v140_v47 = vadd.f32 2.0, %v138_v45 }
  0xf6   :  { %v139_v48 = vadd.f32 2.0, %v137_v46 }
  0xf7   :  { %778 = vrcp.f32 %v140_v47 }
  0xf8   :  { %780 = vrcp.f32 %v139_v48 }
 0x101   :  { %v779_v49 = vpop.eup %778 }
 0x102   :  { %v781_v50 = vpop.eup %780  ;;  %v144_v51 = vmul.f32 %v779_v49, %v138_v45 }
 0x103   :  { %v143_v52 = vmul.f32 %v781_v50, %v137_v46 }
 0x104   :  { %v148_v53 = vmul.f32 %v144_v51, %v126_v34 }
 0x105   :  { %v147_v54 = vmul.f32 %v143_v52, %v121_v36 }
 0x106   :  { %v150_v56 = vsel %vm146_vm2, %v126_v34, %v148_v53  ;;  %v766_v34 = vpack.c.bf16 %v382_v32, %v381_v31 }
 0x107   :  { %v149_v55 = vsel %vm145_vm1, %v121_v36, %v147_v54  ;;  %v286_v36 = vld [vmem:[%s1043_s5 + $0x78] sm:$0xff] }
 0x108   :  { %597 = vmatprep.mubr.f32.mxu1 %v149_v55  ;;  %v738_v39 = vpack.c.bf16 %v286_v36, %v285_v35 }
 0x109   :  { %598 = vmatmul.mubr.f32.vlgmr.msra.gmra.mrb[0].mxu1 %v150_v56 }
 0x10a   :  { %745 = vmatpush3.bf16.msra.mxu1 %v742_v0  ;;  %739 = vmatprep.subr.bf16.mxu0 %v738_v39 }
 0x10b   :  { %747 = vmatprep.subr.bf16.mxu1 %v746_v5  ;;  %741 = vmatpush3.bf16.msra.mxu0 %v738_v39 }
 0x10e   :  { %749 = vmatpush3.bf16.msra.mxu1 %v746_v5 }
 0x10f   :  { %751 = vmatprep.subr.bf16.mxu1 %v750_v10 }
 0x112   :  { %753 = vmatpush3.bf16.msra.mxu1 %v750_v10 }
 0x113   :  { %755 = vmatprep.subr.bf16.mxu1 %v754_v16 }
 0x116   :  { %757 = vmatpush3.bf16.msra.mxu1 %v754_v16 }
 0x117   :  { %759 = vmatprep.subr.bf16.mxu1 %v758_v22 }
 0x11a   :  { %761 = vmatpush3.bf16.msra.mxu1 %v758_v22 }
 0x11b   :  { %763 = vmatprep.subr.bf16.mxu1 %v762_v28 }
 0x11e   :  { %765 = vmatpush3.bf16.msra.mxu1 %v762_v28 }
 0x11f   :  { %767 = vmatprep.subr.bf16.mxu1 %v766_v34 }
 0x122   :  { %769 = vmatpush3.bf16.msra.mxu1 %v766_v34 }
 0x123   :  { %771 = vmatprep.subr.bf16.mxu1 %v770_v40 }
 0x126   :  { %773 = vmatpush3.bf16.msra.mxu1 %v770_v40 }
 0x1dc   :  { %v599_v42 = vpop.f32.mrb[0].mxu1 }
 0x1dd   :  { %v246_v43 = vadd.f32 %v599_v42, %v491_v41  ;;  %v240_v44 = vpop.f32.mrb[1].mxu1 }
 0x1de   :  { %v241_v45 = vadd.f32 %v491_v41, %v240_v44 }
 0x1df   :  { %v250_v46 = vmin.f32 %v246_v43, 20.0  ;;  %vm266_vm4 = vcmp.gt.f32.partialorder %v246_v43, 20.0 }
 0x1e0   :  { %v249_v47 = vmin.f32 %v241_v45, 20.0  ;;  %vm265_vm3 = vcmp.gt.f32.partialorder %v241_v45, 20.0 }
 0x1e1   :  { %v253_v48 = vmul.f32 1.442695, %v250_v46 }
 0x1e2   :  { %v251_v49 = vmul.f32 1.442695, %v249_v47 }
 0x1e3   :  { %782 = vpow2.f32 %v253_v48 }
 0x1e4   :  { %784 = vpow2.f32 %v251_v49 }
 0x1ed   :  { %v783_v50 = vpop.eup %782 }
 0x1ee   :  { %v785_v51 = vpop.eup %784  ;;  %v256_v52 = vadd.f32 2.0, %v783_v50 }
 0x1ef   :  { %v255_v53 = vadd.f32 2.0, %v785_v51 }
 0x1f0   :  { %v258_v54 = vmul.f32 %v783_v50, %v256_v52 }
 0x1f1   :  { %v257_v55 = vmul.f32 %v785_v51, %v255_v53 }
 0x1f2   :  { %v260_v56 = vadd.f32 2.0, %v258_v54 }
 0x1f3   :  { %v259_v57 = vadd.f32 2.0, %v257_v55 }
 0x1f4   :  { %786 = vrcp.f32 %v260_v56 }
 0x1f5   :  { %788 = vrcp.f32 %v259_v57 }
 0x1fe   :  { %v787_v58 = vpop.eup %786 }
 0x1ff   :  { %v789_v59 = vpop.eup %788  ;;  %v264_v60 = vmul.f32 %v787_v58, %v258_v54 }
 0x200   :  { %v263_v61 = vmul.f32 %v789_v59, %v257_v55 }
 0x201   :  { %v268_v62 = vmul.f32 %v264_v60, %v246_v43 }
 0x202   :  { %v267_v63 = vmul.f32 %v263_v61, %v241_v45 }
 0x203   :  { %v270_v1 = vsel %vm266_vm4, %v246_v43, %v268_v62 }
 0x204   :  { %v269_v0 = vsel %vm265_vm3, %v241_v45, %v267_v63 }
 0x205   :  { %632 = vmatprep.mubr.f32.mxu0 %v269_v0  ;;  %667 = vmatprep.mubr.f32.mxu1 %v269_v0 }
 0x206   :  { %633 = vmatmul.mubr.f32.vlgmr.msra.gmra.mrb[2].mxu0 %v270_v1  ;;  %668 = vmatmul.mubr.f32.vlgmr.msra.gmra.mrb[2].mxu1 %v270_v1 }
 0x2d9   :  { %v634_v4 = vpop.f32.mrb[2].mxu0  ;;  %v669_v5 = vpop.f32.mrb[2].mxu1 }
 0x2da   :  { %v366_v6 = vadd.f32 %v634_v4, %v492_v2  ;;  %v464_v7 = vadd.f32 %v669_v5, %v493_v3  ;;  %v360_v8 = vpop.f32.mrb[3].mxu0  ;;  %v458_v9 = vpop.f32.mrb[3].mxu1 }
 0x2db   :  { %v361_v10 = vadd.f32 %v492_v2, %v360_v8  ;;  %v459_v11 = vadd.f32 %v493_v3, %v458_v9 }
 0x2dc   :  { %469 = vst.msk [vmem:[%s1048_s9 + $0x8] sm:$0xff] %vm467_vm5, %v366_v6  ;;  %v471_v12 = vmax.f32 %v464_v7, -20.0 }
 0x2dd   :  { %468 = vst.msk [vmem:[%s1048_s9] sm:$0xff] %vm467_vm5, %v361_v10  ;;  %v470_v13 = vmax.f32 %v459_v11, -20.0 }
 0x2de   :  { %v473_v14 = vmin.f32 %v471_v12, 2.0 }
 0x2df   :  { %v472_v15 = vmin.f32 %v470_v13, 2.0 }
 0x2e0   :  { %v476_v16 = vmul.f32 1.442695, %v473_v14 }
 0x2e1   :  { %v474_v17 = vmul.f32 1.442695, %v472_v15 }
 0x2e2   :  { %790 = vpow2.f32 %v476_v16 }
 0x2e3   :  { %792 = vpow2.f32 %v474_v17 }
 0x2ec   :  { %v791_v18 = vpop.eup %790 }
 0x2ed   :  { %v793_v19 = vpop.eup %792  ;;  %479 = vst.msk [vmem:[%s1049_s10 + $0x8] sm:$0xff] %vm467_vm5, %v791_v18 }
 0x2ee   :  { %478 = vst.msk [vmem:[%s1049_s10] sm:$0xff] %vm467_vm5, %v793_v19 }

</bundles_post_ra>
